<compile_context>
chip_gen: v7x
topology: tpu7x:2x2x1
jax: 0.10.0
libtpu: 0.0.40
codegen_flags: <defaults>
</compile_context>

<pallas_src>
import jax
import jax.numpy as jnp
from jax import lax
from jax.experimental import pallas as pl
from jax.experimental.pallas import tpu as pltpu


def _cdiv(a, b):
    return -(-a // b)


def _round_up(a, b):
    return _cdiv(a, b) * b


# ----------------------------- tiling knobs ---------------------------------
_LANE_TILE = 512              # max L_out tile (multiple of 128)
_MIN_LANE_TILE = 128          # lane-dense outputs even for tiny L (unmasked vst)
_CIN_TILE = 256               # C_in reduction tile when the weight is not resident
_CIN_ALIGN = 16               # bf16 sublane packing for the input rows
_W_RESIDENT_BYTES = 8 * 2**20   # keep whole (padded) weight resident if <= this
_XROW_BUDGET_BYTES = 6 * 2**20  # pass whole padded input rows if <= this


def _vmem_limit_bytes():
    """Scoped-VMEM request: ~75% of physical (v5e/v6e 128MiB->96MiB, v7x 64MiB->48MiB)."""
    try:
        cap = int(pltpu.get_tpu_info().vmem_capacity_bytes)
    except Exception:
        cap = 64 * 2**20          # unknown generation: conservative default
    return max(32 * 2**20, min(int(cap * 3 // 4), 100 * 2**20))


# ----------------------------- Pallas kernel --------------------------------

def _make_corr_kernel(k_taps, tl, nt, l_valid, *, with_stats, full_row, single_pass):
    """Stride-1 VALID correlation.  Grid = (batch, L-tile, C_in-tile).

    x_ref : full_row -> (1, ci, lx_pad)  (whole padded row, window sliced in-kernel)
            else     -> (1, 1, ci, tl+K-1)  (pre-windowed tile with K-1 halo)
    w_ref : (1, K, C_out, ci)   bf16
    b_ref : (C_out, 1)          f32 (pre-loaded into the accumulator)
    o_ref : (1, C_out, tl)
    stats_ref (if with_stats): (1, 1, C_out, 2) per-tile (sum, sumsq) of biased output
    acc_ref (if not single_pass): (C_out, tl) f32 scratch accumulator
    """
    tlw = tl + k_taps - 1

    def kernel(x_ref, w_ref, b_ref, o_ref, *rest):
        rest = list(rest)
        stats_ref = rest.pop(0) if with_stats else None
        acc_ref = rest.pop(0) if not single_pass else None

        t = pl.program_id(1)

        if full_row:
            start = pl.multiple_of(t * tl, 128)
            win = x_ref[0, :, pl.ds(start, tlw)]        # (ci, tl + K - 1)
        else:
            win = x_ref[0, 0]                           # (ci, tl + K - 1)

        def add_taps(acc):
            # Unrolled per-tap accumulation: K matmuls with a full (C_out, ci)
            # x (ci, tl) contraction each -- no im2col temporary, no sublane
            # concatenate burning the vst slot.
            for kk in range(k_taps):
                acc = acc + jnp.dot(w_ref[0, kk], win[:, kk:kk + tl],
                                    preferred_element_type=jnp.float32)
            return acc

        def finalize(y):
            o_ref[0] = y.astype(o_ref.dtype)
            if with_stats:
                def write_stats(yv):
                    s1 = jnp.sum(yv, axis=1, keepdims=True)
                    s2 = jnp.sum(yv * yv, axis=1, keepdims=True)
                    stats_ref[0, 0] = jnp.concatenate([s1, s2], axis=1)

                if l_valid % tl == 0:                   # no padded columns at all
                    write_stats(y)
                else:
                    # only the last L-tile carries padded (bias-valued) columns
                    @pl.when(t == nt - 1)
                    def _():
                        col = lax.broadcasted_iota(jnp.int32, y.shape, 1) + t * tl
                        write_stats(jnp.where(col < l_valid, y, 0.0))

                    @pl.when(t != nt - 1)
                    def _():
                        write_stats(y)

        def bias_tile():
            return jnp.broadcast_to(b_ref[...], (b_ref.shape[0], tl))

        if single_pass:                                  # nc == 1: no revisit logic
            finalize(add_taps(bias_tile()))
        else:
            c = pl.program_id(2)

            @pl.when(c == 0)
            def _():
                acc_ref[...] = bias_tile()

            acc_ref[...] = add_taps(acc_ref[...])

            @pl.when(c == pl.num_programs(2) - 1)
            def _():
                finalize(acc_ref[...])

    return kernel


def conv1d_stride1_pallas(x, w, bias, *, with_stats=False, out_dtype=None):
    """VALID stride-1 cross-correlation (hot path of both forward modes).

    x: (N, C_in, Lx), w: (C_out, C_in, K), bias: (C_out,).
    Returns y: (N, C_out, Lx-K+1); with_stats additionally returns the
    per-channel (sum, sum-of-squares) of the biased output, shape (C_out, 2).
    """
    n, c_in, lx = x.shape
    c_out, _, k = w.shape
    l_out = lx - k + 1
    assert l_out >= 1 and w.shape[1] == c_in
    out_dtype = out_dtype or x.dtype

    # ---- tile selection -----------------------------------------------------
    # Lane-dense L tile: always a multiple of 128 so output stores are unmasked
    # and the MXU N-dim is full; padded tail columns are cropped below and
    # masked out of the BN statistics in-kernel.
    tl = min(_LANE_TILE, _round_up(max(l_out, _MIN_LANE_TILE), 128))
    nt = _cdiv(l_out, tl)
    l_pad = nt * tl

    c_in_al = _round_up(c_in, _CIN_ALIGN)
    w_bytes = c_out * k * c_in_al * 2
    if c_in_al <= _CIN_TILE or w_bytes <= _W_RESIDENT_BYTES:
        ci_tile, nc = c_in_al, 1        # weight resident in VMEM, DMA'd once
    else:
        ci_tile = _CIN_TILE
        nc = _cdiv(c_in_al, ci_tile)
    c_in_pad = nc * ci_tile

    tlw = tl + k - 1
    lx_pad = _round_up(l_pad + k - 1, 128)
    # Whole padded rows (window sliced in-kernel) whenever they fit VMEM:
    # avoids materializing overlapping halo windows in HBM.
    full_row = (nc == 1) and (c_in_pad * lx_pad * 2 <= _XROW_BUDGET_BYTES)

    # ---- operand prep: bf16 MXU inputs, f32 accumulation in-kernel ----------
    xb = x.astype(jnp.bfloat16)
    if full_row:
        xb = jnp.pad(xb, ((0, 0), (0, c_in_pad - c_in), (0, lx_pad - lx)))
        x_arg = xb
        x_spec = pl.BlockSpec((1, c_in_pad, lx_pad), lambda i, t, c: (i, 0, 0))
    else:
        xb = jnp.pad(xb, ((0, 0), (0, c_in_pad - c_in), (0, l_pad + k - 1 - lx)))
        idx = jnp.arange(nt)[:, None] * tl + jnp.arange(tlw)[None, :]
        x_arg = jnp.transpose(xb[:, :, idx], (0, 2, 1, 3))   # (n, nt, c_in_pad, tlw)
        x_spec = pl.BlockSpec((1, 1, ci_tile, tlw), lambda i, t, c: (i, t, c, 0))

    wb = jnp.pad(w.astype(jnp.bfloat16), ((0, 0), (0, c_in_pad - c_in), (0, 0)))
    wt = jnp.transpose(wb.reshape(c_out, nc, ci_tile, k), (1, 3, 0, 2))  # (nc,K,Co,ci)
    w_spec = pl.BlockSpec((1, k, c_out, ci_tile), lambda i, t, c: (c, 0, 0, 0))

    b2 = bias.reshape(c_out, 1).astype(jnp.float32)
    b_spec = pl.BlockSpec((c_out, 1), lambda i, t, c: (0, 0))

    out_shape = [jax.ShapeDtypeStruct((n, c_out, l_pad), out_dtype)]
    out_specs = [pl.BlockSpec((1, c_out, tl), lambda i, t, c: (i, 0, t))]
    if with_stats:
        out_shape.append(jax.ShapeDtypeStruct((n, nt, c_out, 2), jnp.float32))
        out_specs.append(pl.BlockSpec((1, 1, c_out, 2), lambda i, t, c: (i, t, 0, 0)))

    scratch = [] if nc == 1 else [pltpu.VMEM((c_out, tl), jnp.float32)]

    # TODO(synk): when N == 1 and nt == 1 the two 'parallel' axes collapse and a
    # v7x megacore TC idles; a parallel C_out tile axis would restore 2-way work.
    res = pl.pallas_call(
        _make_corr_kernel(k, tl, nt, l_out, with_stats=with_stats,
                          full_row=full_row, single_pass=(nc == 1)),
        out_shape=out_shape,
        grid=(n, nt, nc),
        in_specs=[x_spec, w_spec, b_spec],
        out_specs=out_specs,
        scratch_shapes=scratch,
        compiler_params=pltpu.CompilerParams(
            dimension_semantics=("parallel", "parallel", "arbitrary"),
            vmem_limit_bytes=_vmem_limit_bytes()),
    )(x_arg, wt, b2)

    y = res[0][:, :, :l_out]
    if with_stats:
        return y, jnp.sum(res[1], axis=(0, 1))              # (C_out, 2)
    return y


# ------------------------------ JAX glue -------------------------------------

def _pad_or_crop_last(x, left, right):
    """Zero-pad (positive) or crop (negative) the last axis."""
    l = x.shape[-1]
    x = x[..., max(-left, 0): l - max(-right, 0)]
    return jnp.pad(x, ((0, 0), (0, 0), (max(left, 0), max(right, 0))))


def _apply_batch_norm(y, sums, count, gamma, beta, eps=1e-5):
    """Training-mode BatchNorm1d from fused (sum, sumsq); one elementwise pass."""
    mean = sums[:, 0] / count
    var = sums[:, 1] / count - mean * mean                   # biased variance
    inv = lax.rsqrt(var + eps)
    scale = (gamma * inv).reshape(1, -1, 1)
    shift = (beta - gamma * mean * inv).reshape(1, -1, 1)
    return y * scale + shift


def transpose1d_layer_forward(x, params, *, kernel_size, stride, padding=11,
                              upsample=None, output_padding=1,
                              use_batch_norm=False):
    """Forward pass of Transpose1dLayer. x: (N, C_in, L), NCL layout."""
    n, _, l_in = x.shape
    k, s = kernel_size, stride
    out_dtype = x.dtype

    if upsample:
        # nearest upsample (integer scale) + ConstantPad1d(k//2) + Conv1d(stride=s)
        w, bias = params["conv_weight"], params["conv_bias"]
        # TODO(synk): fold the nearest-repeat into the polyphase decomposition so
        # the upsample*L intermediate is never materialized; bf16 halves it for now.
        # TODO(synk): non-integer nearest-upsample scale factors are not handled;
        # WaveGAN only uses integer scale factors.
        x_pad = jnp.pad(jnp.repeat(x.astype(jnp.bfloat16), int(upsample), axis=-1),
                        ((0, 0), (0, 0), (k // 2, k // 2)))
        n_out = (x_pad.shape[-1] - k) // s + 1
        if s == 1:
            if use_batch_norm:
                y, sums = conv1d_stride1_pallas(x_pad, w, bias, with_stats=True,
                                                out_dtype=out_dtype)
            else:
                y = conv1d_stride1_pallas(x_pad, w, bias, out_dtype=out_dtype)
        else:
            # input polyphase: strided conv = sum over phases r of stride-1
            # correlations of x_pad[..., r::s] with w[..., r::s]; no output
            # column is computed and then discarded by ::s slicing.
            y = None
            for r in range(s):
                w_r = w[:, :, r::s]
                if w_r.shape[-1] == 0:
                    continue
                b_r = bias if y is None else jnp.zeros_like(bias)
                y_r = conv1d_stride1_pallas(x_pad[:, :, r::s], w_r, b_r,
                                            out_dtype=out_dtype)[:, :, :n_out]
                y = y_r if y is None else y + y_r
            if use_batch_norm:
                # un-fused fallback: phases sum into the same output columns, so
                # in-kernel partial stats are not valid here (WaveGAN never pairs
                # upsample with stride > 1).
                sums = jnp.stack([jnp.sum(y, axis=(0, 2)),
                                  jnp.sum(y * y, axis=(0, 2))], axis=1)
        l_out = y.shape[-1]
    else:
        # ConvTranspose1d(in, out, k, s, padding, output_padding); weight (C_in,C_out,K).
        # Output polyphase (sub-pixel): output columns with (m+padding) % s == r only
        # see taps t = r (mod s).  Each phase is a stride-1 correlation of the
        # un-dilated x with the flipped sub-filter; phases are then combined with one
        # contiguous stack+reshape interleave + crop (no stride-s scatters over y).
        w, bias = params["convT_weight"], params["convT_bias"]
        c_out = w.shape[1]
        p, op = padding, output_padding
        l_out = (l_in - 1) * s - 2 * p + k + op
        x16 = x.astype(jnp.bfloat16)

        q_min = [-((r - p) // s) for r in range(s)]          # ceil((p - r) / s)
        q_max = [(l_out - 1 + p - r) // s for r in range(s)]
        q_lo, q_hi = min(q_min), max(q_max)
        n_q = q_hi - q_lo + 1

        sums = jnp.zeros((c_out, 2), jnp.float32)
        phases = []
        for r in range(s):
            t_r = len(range(r, k, s))
            n_r = q_max[r] - q_min[r] + 1
            if n_r <= 0:
                phases.append(jnp.zeros((n, c_out, n_q), out_dtype))
                continue
            if t_r == 0:
                # only when k < s: bias-only output columns
                y_r = jnp.broadcast_to(bias.reshape(1, -1, 1).astype(out_dtype),
                                       (n, c_out, n_r))
                sums = sums + n * n_r * jnp.stack([bias, bias * bias], axis=1)
            else:
                w_r = jnp.transpose(jnp.flip(w[:, :, r::s], axis=-1), (1, 0, 2))
                x_r = _pad_or_crop_last(x16, t_r - 1 - q_min[r], q_max[r] - (l_in - 1))
                if use_batch_norm:
                    y_r, s_r = conv1d_stride1_pallas(x_r, w_r, bias, with_stats=True,
                                                     out_dtype=out_dtype)
                    sums = sums + s_r
                else:
                    y_r = conv1d_stride1_pallas(x_r, w_r, bias, out_dtype=out_dtype)
            # pad every phase to the common q range; padded columns map to output
            # positions outside [0, l_out) and are removed by the final crop.
            phases.append(jnp.pad(y_r, ((0, 0), (0, 0),
                                        (q_min[r] - q_lo, q_hi - q_max[r]))))
        inter = jnp.stack(phases, axis=-1).reshape(n, c_out, n_q * s)
        off = p - s * q_lo                                    # >= 0 by construction
        y = lax.slice_in_dim(inter, off, off + l_out, axis=2)

    if use_batch_norm:
        y = _apply_batch_norm(y, sums, n * l_out,
                              params["bn_gamma"], params["bn_beta"])
    return y.astype(out_dtype)


def init_params(key, in_channels, out_channels, kernel_size):
    ks = jax.random.split(key, 4)
    return {
        # conv1d.weight.data.normal_(0.0, 0.02); Conv1d weight (C_out, C_in, K)
        "conv_weight": 0.02 * jax.random.normal(
            ks[0], (out_channels, in_channels, kernel_size), jnp.float32),
        "conv_bias": 0.01 * jax.random.normal(ks[1], (out_channels,), jnp.float32),
        # ConvTranspose1d weight layout (C_in, C_out, K)
        "convT_weight": 0.02 * jax.random.normal(
            ks[2], (in_channels, out_channels, kernel_size), jnp.float32),
        "convT_bias": 0.01 * jax.random.normal(ks[3], (out_channels,), jnp.float32),
        # BatchNorm1d defaults: weight=1, bias=0
        "bn_gamma": jnp.ones((out_channels,), jnp.float32),
        "bn_beta": jnp.zeros((out_channels,), jnp.float32),
    }


# --------------------------- references (for checks) -------------------------

def _conv1d_ref(x, w, bias, stride=1):
    y = lax.conv_general_dilated(
        x, w, window_strides=(stride,), padding="VALID",
        dimension_numbers=("NCH", "OIH", "NCH"))
    return y + bias.reshape(1, -1, 1)


def _conv_transpose1d_ref(x, w_ict, bias, stride, padding, output_padding):
    k = w_ict.shape[-1]
    w_oik = jnp.transpose(jnp.flip(w_ict, axis=-1), (1, 0, 2))
    lo = k - 1 - padding
    hi = k - 1 - padding + output_padding
    y = lax.conv_general_dilated(
        x, w_oik, window_strides=(1,), padding=[(lo, hi)],
        lhs_dilation=(stride,), dimension_numbers=("NCH", "OIH", "NCH"))
    return y + bias.reshape(1, -1, 1)


if __name__ == "__main__":
    key = jax.random.PRNGKey(0)
    kx, kp = jax.random.split(key)

    N, C_IN, C_OUT, L, K = 2, 4, 8, 16, 5
    x = jax.random.normal(kx, (N, C_IN, L), jnp.float32)
    params = init_params(kp, C_IN, C_OUT, K)

    # NOTE: operands are intentionally bf16-quantized inside the kernel (MXU) with
    # f32 accumulation; references use bf16-quantized operands so the check
    # isolates kernel math rather than the quantization tradeoff.
    q = lambda a: a.astype(jnp.bfloat16).astype(jnp.float32)
    tol = dict(atol=1e-4, rtol=1e-4)

    # --- path 1: ConvTranspose1d (upsample=None), output-polyphase ----------
    S, P, OP = 2, 2, 1
    y_t = jax.block_until_ready(transpose1d_layer_forward(
        x, params, kernel_size=K, stride=S, padding=P, upsample=None,
        output_padding=OP))
    assert y_t.shape == (N, C_OUT, (L - 1) * S - 2 * P + K + OP), y_t.shape
    ref_t = _conv_transpose1d_ref(q(x), q(params["convT_weight"]),
                                  params["convT_bias"], S, P, OP)
    assert jnp.allclose(y_t, ref_t, **tol), float(jnp.max(jnp.abs(y_t - ref_t)))

    # --- path 2: nearest upsample + pad + Conv1d (stride 1) -----------------
    y_u1 = jax.block_until_ready(transpose1d_layer_forward(
        x, params, kernel_size=K, stride=1, upsample=2))
    assert y_u1.shape == (N, C_OUT, 2 * L), y_u1.shape
    xu_q = jnp.pad(jnp.repeat(q(x), 2, axis=-1),
                   ((0, 0), (0, 0), (K // 2, K // 2)))
    ref_u1 = _conv1d_ref(xu_q, q(params["conv_weight"]), params["conv_bias"], 1)
    assert jnp.allclose(y_u1, ref_u1, **tol)

    # --- path 3: upsample + Conv1d with stride 2 (stride folded) ------------
    y_u2 = jax.block_until_ready(transpose1d_layer_forward(
        x, params, kernel_size=K, stride=2, upsample=2))
    ref_u2 = _conv1d_ref(xu_q, q(params["conv_weight"]), params["conv_bias"], 2)
    assert y_u2.shape == ref_u2.shape, (y_u2.shape, ref_u2.shape)
    assert jnp.allclose(y_u2, ref_u2, **tol)

    # --- path 4: ConvTranspose1d + BatchNorm (fused in-kernel stats) --------
    y_bn = jax.block_until_ready(transpose1d_layer_forward(
        x, params, kernel_size=K, stride=S, padding=P, upsample=None,
        output_padding=OP, use_batch_norm=True))
    mean = jnp.mean(y_t, axis=(0, 2), keepdims=True)
    var = jnp.var(y_t, axis=(0, 2), keepdims=True)
    ref_bn = (params["bn_gamma"].reshape(1, -1, 1) * (y_t - mean)
              * lax.rsqrt(var + 1e-5) + params["bn_beta"].reshape(1, -1, 1))
    assert jnp.allclose(y_bn, ref_bn, atol=1e-3, rtol=1e-3)

    # --- path 5: ConvTranspose1d with stride 4 (uneven phases, crop off>0) ---
    S4, P4, OP4 = 4, 3, 1
    y_t4 = jax.block_until_ready(transpose1d_layer_forward(
        x, params, kernel_size=K, stride=S4, padding=P4, upsample=None,
        output_padding=OP4))
    ref_t4 = _conv_transpose1d_ref(q(x), q(params["convT_weight"]),
                                   params["convT_bias"], S4, P4, OP4)
    assert y_t4.shape == ref_t4.shape, (y_t4.shape, ref_t4.shape)
    assert jnp.allclose(y_t4, ref_t4, **tol)

    print("KERNEL_OK")
</pallas_src>

<mosaic_0001>
module attributes {stable_mosaic.version = 11 : i64} {
  func.func @kernel(%arg0: i32, %arg1: i32, %arg2: i32, %arg3: memref<1x16x256xbf16, #tpu.memory_space<vmem>>, %arg4: memref<1x3x8x16xbf16, #tpu.memory_space<vmem>>, %arg5: memref<8x1xf32, #tpu.memory_space<vmem>>, %arg6: memref<1x8x128xf32, #tpu.memory_space<vmem>>) attributes {dimension_semantics = [#tpu.dimension_semantics<parallel>, #tpu.dimension_semantics<parallel>, #tpu.dimension_semantics<arbitrary>], iteration_bounds = array<i64: 2, 1, 1>, scalar_prefetch = 0 : i64, scratch_operands = 0 : i64, tpu.core_type = #tpu.core_type<tc>, window_params = [{transform_indices = @transform_0, window_bounds = array<i64: 1, 16, 256>}, {transform_indices = @transform_1, window_bounds = array<i64: 1, 3, 8, 16>}, {pipeline_mode = #tpu.pipeline_mode<synchronous>, transform_indices = @transform_2, window_bounds = array<i64: 8, 1>}, {transform_indices = @transform_3, window_bounds = array<i64: 1, 8, 128>}]} {
    %c128_i32 = arith.constant 128 : i32
    %0 = arith.muli %arg1, %c128_i32 : i32
    %1 = tpu.assume_multiple %0, 128 : i32
    %c0 = arith.constant 0 : index
    %c0_0 = arith.constant 0 : index
    %2 = arith.index_cast %1 : i32 to index
    %3 = vector.load %arg3[%c0, %c0_0, %2] : memref<1x16x256xbf16, #tpu.memory_space<vmem>>, vector<1x16x130xbf16>
    %4 = vector.shape_cast %3 : vector<1x16x130xbf16> to vector<16x130xbf16>
    %c0_1 = arith.constant 0 : index
    %c0_2 = arith.constant 0 : index
    %5 = vector.load %arg5[%c0_1, %c0_2] : memref<8x1xf32, #tpu.memory_space<vmem>>, vector<8x1xf32>
    %6 = vector.shape_cast %5 : vector<8x1xf32> to vector<8x1xf32>
    %7 = vector.broadcast %6 : vector<8x1xf32> to vector<8x128xf32>
    %c0_3 = arith.constant 0 : index
    %c0_4 = arith.constant 0 : index
    %c0_5 = arith.constant 0 : index
    %c0_6 = arith.constant 0 : index
    %8 = vector.load %arg4[%c0_3, %c0_4, %c0_5, %c0_6] : memref<1x3x8x16xbf16, #tpu.memory_space<vmem>>, vector<1x1x8x16xbf16>
    %9 = vector.shape_cast %8 : vector<1x1x8x16xbf16> to vector<8x16xbf16>
    %10 = vector.extract_strided_slice %4 {offsets = [0, 0], sizes = [16, 128], strides = [1, 1]} : vector<16x130xbf16> to vector<16x128xbf16>
    %cst = arith.constant dense<0.000000e+00> : vector<8x128xf32>
    %11 = tpu.matmul %9, %10, %cst {dimension_numbers = #tpu.dot_dimension_numbers<[1], [0], [0], [1], [0, 0, 1, 1], [], []>} : vector<8x16xbf16>, vector<16x128xbf16>, vector<8x128xf32> -> vector<8x128xf32>
    %12 = arith.addf %7, %11 : vector<8x128xf32>
    %c0_7 = arith.constant 0 : index
    %c1 = arith.constant 1 : index
    %c0_8 = arith.constant 0 : index
    %c0_9 = arith.constant 0 : index
    %13 = vector.load %arg4[%c0_7, %c1, %c0_8, %c0_9] : memref<1x3x8x16xbf16, #tpu.memory_space<vmem>>, vector<1x1x8x16xbf16>
    %14 = vector.shape_cast %13 : vector<1x1x8x16xbf16> to vector<8x16xbf16>
    %15 = vector.extract_strided_slice %4 {offsets = [0, 1], sizes = [16, 128], strides = [1, 1]} : vector<16x130xbf16> to vector<16x128xbf16>
    %cst_10 = arith.constant dense<0.000000e+00> : vector<8x128xf32>
    %16 = tpu.matmul %14, %15, %cst_10 {dimension_numbers = #tpu.dot_dimension_numbers<[1], [0], [0], [1], [0, 0, 1, 1], [], []>} : vector<8x16xbf16>, vector<16x128xbf16>, vector<8x128xf32> -> vector<8x128xf32>
    %17 = arith.addf %12, %16 : vector<8x128xf32>
    %c0_11 = arith.constant 0 : index
    %c2 = arith.constant 2 : index
    %c0_12 = arith.constant 0 : index
    %c0_13 = arith.constant 0 : index
    %18 = vector.load %arg4[%c0_11, %c2, %c0_12, %c0_13] : memref<1x3x8x16xbf16, #tpu.memory_space<vmem>>, vector<1x1x8x16xbf16>
    %19 = vector.shape_cast %18 : vector<1x1x8x16xbf16> to vector<8x16xbf16>
    %20 = vector.extract_strided_slice %4 {offsets = [0, 2], sizes = [16, 128], strides = [1, 1]} : vector<16x130xbf16> to vector<16x128xbf16>
    %cst_14 = arith.constant dense<0.000000e+00> : vector<8x128xf32>
    %21 = tpu.matmul %19, %20, %cst_14 {dimension_numbers = #tpu.dot_dimension_numbers<[1], [0], [0], [1], [0, 0, 1, 1], [], []>} : vector<8x16xbf16>, vector<16x128xbf16>, vector<8x128xf32> -> vector<8x128xf32>
    %22 = arith.addf %17, %21 : vector<8x128xf32>
    %c0_15 = arith.constant 0 : index
    %c0_16 = arith.constant 0 : index
    %c0_17 = arith.constant 0 : index
    %23 = vector.load %arg6[%c0_15, %c0_16, %c0_17] : memref<1x8x128xf32, #tpu.memory_space<vmem>>, vector<1x8x128xf32>
    %24 = vector.shape_cast %23 : vector<1x8x128xf32> to vector<8x128xf32>
    %25 = vector.shape_cast %22 : vector<8x128xf32> to vector<1x8x128xf32>
    tpu.vector_store %arg6[%c0_15, %c0_16, %c0_17], %25 {strides = array<i32>} : memref<1x8x128xf32, #tpu.memory_space<vmem>>, vector<1x8x128xf32>,
    return
  }
  func.func @transform_0(%arg0: i32, %arg1: i32, %arg2: i32) -> (i32, i32, i32) {
    %c0_i32 = arith.constant 0 : i32
    %c0_i32_0 = arith.constant 0 : i32
    %c0_i32_1 = arith.constant 0 : i32
    return %arg0, %c0_i32, %c0_i32_0 : i32, i32, i32
  }
  func.func @transform_1(%arg0: i32, %arg1: i32, %arg2: i32) -> (i32, i32, i32, i32) {
    %c0_i32 = arith.constant 0 : i32
    %c0_i32_0 = arith.constant 0 : i32
    %c0_i32_1 = arith.constant 0 : i32
    %c0_i32_2 = arith.constant 0 : i32
    return %arg2, %c0_i32, %c0_i32_0, %c0_i32_1 : i32, i32, i32, i32
  }
  func.func @transform_2(%arg0: i32, %arg1: i32, %arg2: i32) -> (i32, i32) {
    %c0_i32 = arith.constant 0 : i32
    %c0_i32_0 = arith.constant 0 : i32
    %c0_i32_1 = arith.constant 0 : i32
    return %c0_i32, %c0_i32_0 : i32, i32
  }
  func.func @transform_3(%arg0: i32, %arg1: i32, %arg2: i32) -> (i32, i32, i32) {
    %c0_i32 = arith.constant 0 : i32
    %c0_i32_0 = arith.constant 0 : i32
    return %arg0, %c0_i32, %arg1 : i32, i32, i32
  }
}

</mosaic_0001>

<bundles_post_ra>
// kernel: tpu_custom_call.1
= control target key start
LH: loop header
LB: loop body
LE: loop exit
PB: predicated region body
PF: predicated region fallthrough
CT: control target
= control target key end

     0   :  { %8 = vsyncpa [#allocation3], 0  ;;  %s981_s0 = inlined_call_operand.hbm [shape: bf16[2,16,256], index: 0, kind: input, shape index: {}]   ;;  %s982_s1 = inlined_call_operand.vmem [shape: bf16[1,3,8,16], index: 1, kind: input, shape index: {}]   ;;  %s983_s2 = inlined_call_operand.vmem [shape: f32[8,1], index: 2, kind: input, shape index: {}]   ;;  %s984_s3 = inlined_call_operand.hbm [shape: f32[2,8,128], index: 3, kind: output, shape index: {}]  }
   0x1   :  { %10 = vsyncpa [#allocation3 + $0x1], 0 }
   0x2   :  { %11 = vsyncpa [#allocation4], 0 }
   0x3   :  { %13 = vsyncpa [#allocation4 + $0x1], 0  ;;  %s789_s12 = smov 0   ;;  %s791_s13 = smov 0  }
   0x4   :  { %s793_s14 = smov 0   ;;  %s795_s15 = smov 0  }
   0x5   :  { %s797_s16 = smov 0   ;;  %s799_s17 = smov 0  }
   0x6 LB: > { %s520_s18 = sadd.s32 4294967295, %s758_s17   ;;  %s521_s19 = sadd.s32 4294967294, %s758_s17   ;;  %s758_s17 = sphi %s799_s17, %s19_s17   ;;  %s754_s16 = sphi %s797_s16, %s999_s16   ;;  %s750_s15 = sphi %s795_s15, %s998_s15   ;;  %s746_s14 = sphi %s793_s14, %s997_s14   ;;  %s742_s13 = sphi %s791_s13, %s996_s13   ;;  %s738_s12 = sphi %s789_s12, %s995_s12  }
   0x7   : > { %s38_s20 = sadd.s32 1, %s754_s16  ;;  %s45_s21 = sadd.s32 1, %s746_s14 }
   0x8   : > { %p40_p0 = scmp.ge.s32.totalorder %s38_s20, 2  ;;  %p52_p1 = scmp.ne.s32.totalorder %s746_s14, %s742_s13 }
   0x9   : > { %p53_p2 = scmp.eq.s32.totalorder %s758_s17, 0  ;;  %p58_p3 = scmp.ne.s32.totalorder %s742_s13, %s738_s12 }
   0xa   : > { %s1001_s20 = smov (%p40_p0, %s38_s20), 0  ;;  %p59_p5 = scmp.eq.s32.totalorder %s520_s18, 0 }
   0xb   : > { %p830_p4 = por %p53_p2, %p52_p1  ;;  %s42_s23 = ssub.s32 %s754_s16, %s1001_s20 }
   0xc   : > { %p131_p6 = scmp.eq.s32.totalorder %s520_s18, 1  ;;  %p43_p7 = scmp.eq.s32.totalorder %s42_s23, 0 }
   0xd   : > { %p836_p8 = por %p59_p5, %p58_p3  ;;  %p137_p10 = scmp.eq.s32.totalorder %s521_s19, 1 }
   0xe   : > { %p840_p9 = por %p131_p6, %p52_p1  ;;  %p585_p13 = scmp.lt.s32.totalorder %s758_s17, 2 }
   0xf   : > { %s845_s26 = scalar_select %p43_p7, %s746_s14, %s45_s21  }
  0x10   : > { %s988_s25 = scalar_select %p840_p9, 1, 0 }
  0x11   : > { %p847_p11 = por %p137_p10, %p58_p3  ;;  %s168_s28 = sand.u32 1, %s746_s14  }
  0x12   : > { %s525_s29 = sshll.u32 %s168_s28, 4  ;;  %s542_s30 = sshll.u32 %s754_s16, 8 }
  0x13   : > { %s989_s27 = scalar_select %p847_p11, 1, 0 }
  0x14   : > { %s858_s6 = scalar_lea.hbm %s981_s0, %s542_s30  ;;  %s172_s7 = scalar_lea.vmem [#allocation2], %s525_s29 }
  0x15   : > { %s179_s8 = sshll.u32 %s172_s7, 4  ;;  %p864_p0 = pnand %p585_p13, %p830_p4  ;;  %s860_s8 = int_to_ptr.vmem [resolvable:$true] %s179_s8 }
  0x16   : > { %s869_s10 = scalar_lea.sflag [#allocation3], %s168_s28  ;;  %s646_s11 = scalar_lea.hbm %s858_s6, 256 }
  0x17   : > { %p647_p2 = scmp.ne.s32.totalorder %s858_s6, %s646_s11  ;;  %p648_p3 = pneg %p864_p0 }
  0x18   : > { %s651_s21 = scalar_lea.hbm %s981_s0, 512  ;;  %p652_p4 = scmp.lt.u32.totalorder %s858_s6, %s981_s0 }
  0x19   : > { %p649_p5 = pnand %p648_p3, %p647_p2  ;;  %p653_p7 = scmp.lt.u32.totalorder %s651_s21, %s646_s11 }
  0x1a   : > { %p655_p13 = scmp.lt.u32.totalorder %s646_s11, %s858_s6 }
  0x1b   : > { %p650_p6 = pneg %p649_p5  ;;  %p654_p10 = por %p653_p7, %p652_p4 }
  0x1d   : > { %p656_p12 = por %p655_p13, %p654_p10 }
  0x1f   : > { %p657_p1 = pnand %p656_p12, %p650_p6 }
  0x21   : > { %660 = shalt.err (!%p657_p1)
}
  0x22   : > { %s661_s28 = scalar_lea.vmem %s860_s8, 256  ;;  %s760_s29 = smov [#allocation2]  }
  0x23   : > { %p662_p2 = scmp.ne.s32.totalorder %s860_s8, %s661_s28  ;;  %s666_s30 = sshll.u32 %s760_s29, 4  ;;  %s667_s30 = int_to_ptr.vmem [resolvable:$false] %s666_s30 }
  0x24   : > { %s668_s4 = scalar_lea.vmem %s667_s30, 512  ;;  %p669_p9 = scmp.lt.s32.totalorder %s860_s8, %s667_s30 }
  0x25   : > { %p664_p5 = pnand %p662_p2, %p648_p3  ;;  %p670_p4 = scmp.lt.s32.totalorder %s668_s4, %s661_s28 }
  0x27   : > { %p665_p11 = pneg %p664_p5  ;;  %p671_p7 = por %p670_p4, %p669_p9 }
  0x29   : > { %p672_p10 = pnand %p671_p7, %p665_p11 }
  0x2b   : > { %675 = shalt.err (!%p672_p10)
}
  0x2c   : > { %s761_s5 = smov 128   ;;  %s762_s7 = smov 8  }
  0x2d   : > { %580 = dma.hbm_to_vmem [thread:$0]  (!%p864_p0), %s858_s6, 256, %s860_s8, %s869_s10, %s761_s5, %s761_s5, %s762_s7  }
  0x2e   : > { %p187_p12 = scmp.lt.s32.totalorder %s758_s17, 3  ;;  %p991_p1 = scmp.ge.s32.totalorder %s758_s17, 1 }
  0x30   : > { %p188_p3 = pnand %p991_p1, %p187_p12 }
  0x31   : > { %s901_s11 = sand.u32 (!%p188_p3), 1, %s742_s13  }
  0x32   : > { %191 = sbr.rel (%p188_p3) target bundleno = 424 (0x1a8), region = 32  ;;  %s529_s18 = sshll.u32 (!%p188_p3), %s901_s11, 4 }
  0x33   : > { %s194_s19 = scalar_lea.sflag (!%p188_p3), [#allocation3], %s901_s11  ;;  %s197_s21 = scalar_lea.vmem (!%p188_p3), [#allocation2], %s529_s18 }
  0x39   : > { %729 = dma.done.wait (%p836_p8), %s194_s19, 256  }
  0x3a   : > { %731 = vsyncadd (%p836_p8), %s194_s19, 4294967040  ;;  %v763_v0 = vmov 0.0   ;;  %vm764_vm0 = vmmov 0   ;;  %v643_v1 = vld [vmem:[%s197_s21] ss:$8 sps:$4 sm:$0xff]   ;;  %s765_s6 = smov 126  }
  0x3b   : > { %555 = vmatprep.subr.bf16.mxu0 %v763_v0  ;;  %549 = vmatprep.subr.bf16.mxu1 %v763_v0  ;;  %s766_s8 = smov 127   ;;  %v645_v2 = vld [vmem:[%s197_s21 + $0x4] ss:$8 sps:$4 sm:$0xff]   ;;  %v244_v3 = vld [vmem:[%s982_s1] sm:$0xf]  ;;  %vm251_vm1 = vcmask 130048  }
  0x3c   : > { %557 = vmatprep.mubr.msk.bf16.mxu0 %vm764_vm0, %v763_v0  ;;  %551 = vmatprep.mubr.msk.bf16.mxu1 %vm764_vm0, %v763_v0  ;;  %v238_v4 = vld [vmem:[%s983_s2] sm:$0xff]  ;;  %v767_v5 = vmov 0   ;;  %vm305_vm2 = vcmask 1039360   ;;  %vm358_vm3 = vcmask 1031168   ;;  %v536_v13 = vld [vmem:[%s982_s1 + $0x8] sm:$0xf] }
  0x3d   : > { %354 = vrot.lane.b32.xlu1 %v643_v1, %s765_s6  ;;  %301 = vrot.lane.b32.xlu0 %v643_v1, %s766_s8  ;;  %v533_v11 = vld [vmem:[%s982_s1 + $0x4] sm:$0xf]  ;;  %s530_s4 = sshll.u32 %s901_s11, 3  ;;  %s539_s5 = sshll.u32 %s750_s15, 7 }
  0x3e   : > { %550 = vmatpush3.bf16.msra.mxu1 %v643_v1  ;;  %642 = vset.pattern.permute.xlu0 %v767_v5  ;;  %s224_s7 = scalar_lea.vmem [#allocation5], %s530_s4  ;;  %p992_p9 = scmp.ne.s32.totalorder %s988_s25, 0 }
  0x3f   : > { %s421_s18 = sshll.u32 %s224_s7, 4  ;;  %s768_s9 = smov [#allocation5]   ;;  %s934_s18 = int_to_ptr.vmem [resolvable:$true] %s421_s18 }
  0x40   : > { %s676_s15 = scalar_lea.vmem %s934_s18, 128  ;;  %s680_s10 = sshll.u32 %s768_s9, 4  ;;  %s681_s10 = int_to_ptr.vmem [resolvable:$false] %s680_s10 }
  0x41   : > { %356 = vrot.lane.b32.xlu1 %v645_v2, %s765_s6  ;;  %303 = vrot.lane.b32.xlu0 %v645_v2, %s766_s8  ;;  %s932_s6 = scalar_lea.hbm %s984_s3, %s539_s5  ;;  %s407_s8 = scalar_lea.sflag [#allocation4], %s901_s11 }
  0x42   : > { %552 = vmatmul.mubr.msk.bf16.vlgmr.msra.gmra.mrb[0].mxu1 %vm251_vm1, %v244_v3  ;;  %p677_p8 = scmp.ne.s32.totalorder %s934_s18, %s676_s15  ;;  %s682_s24 = scalar_lea.vmem %s681_s10, 256 }
  0x43   : > { %p683_p6 = scmp.lt.s32.totalorder %s934_s18, %s681_s10  ;;  %p684_p13 = scmp.lt.s32.totalorder %s682_s24, %s676_s15 }
  0x44   : > { %p678_p11 = pnand %p677_p8, %p992_p9 }
  0x45   : > { %241 = vperm.xlu0 %642, %v238_v4   ;;  %p685_p2 = por %p684_p13, %p683_p6 }
  0x46   : > { %p679_p0 = pneg %p678_p11 }
  0x48   : > { %p686_p5 = pnand %p685_p2, %p679_p0 }
  0xaf   : > { %v355_v6 = vpop.permute.xlu1 %354  ;;  %v302_v7 = vpop.permute.xlu0 %301 }
  0xb3   : > { %v357_v8 = vpop.permute.xlu1 %356  ;;  %v304_v9 = vpop.permute.xlu0 %303 }
  0xb4   : > { %v306_v10 = vsel %vm305_vm2, %v302_v7, %v304_v9  ;;  %v359_v12 = vsel %vm358_vm3, %v355_v6, %v357_v8 }
  0xb5   : > { %556 = vmatpush3.bf16.msra.mxu0 %v306_v10 }
  0xb6   : > { %561 = vmatprep.subr.bf16.mxu0 %v763_v0 }
  0xb8   : > { %558 = vmatmul.mubr.msk.bf16.vlgmr.msra.gmra.mrb[0].mxu0 %vm251_vm1, %v533_v11 }
  0xb9   : > { %562 = vmatpush3.bf16.msra.mxu0 %v359_v12  ;;  %563 = vmatprep.mubr.msk.bf16.mxu0 %vm764_vm0, %v763_v0 }
  0xc4   : > { %564 = vmatmul.mubr.msk.bf16.vlgmr.msra.gmra.mrb[0].mxu0 %vm251_vm1, %v536_v13  ;;  %v242_v18 = vpop.permute.xlu0 %241 }
 0x115   : > { %v289_v14 = vpop.f32.mrb[0].mxu1 }
 0x116   : > { %v553_v15 = vpop.f32.mrb[1].mxu1  ;;  %v295_v19 = vadd.f32 %v289_v14, %v242_v18 }
 0x117   : > { %v292_v16 = vpop.f32.mrb[2].mxu1 }
 0x118   : > { %v554_v17 = vpop.f32.mrb[3].mxu1 }
 0x197   : > { %v398_v20 = vpop.f32.mrb[0].mxu0 }
 0x198   : > { %v568_v21 = vadd.f32 %v398_v20, %v295_v19  ;;  %v565_v22 = vpop.f32.mrb[1].mxu0 }
 0x199   : > { %v401_v23 = vpop.f32.mrb[2].mxu0 }
 0x19a   : > { %405 = vst [vmem:[%s224_s7] sm:$0xff] %v568_v21  ;;  %v566_v24 = vpop.f32.mrb[3].mxu0 }
 0x19b   : > { %689 = shalt.err (!%p686_p5)
}
 0x19c   : > { %s690_s11 = scalar_lea.hbm %s932_s6, 128  ;;  %s694_s28 = scalar_lea.hbm %s984_s3, 256 }
 0x19d   : > { %p691_p4 = scmp.ne.s32.totalorder %s932_s6, %s690_s11  ;;  %p695_p12 = scmp.lt.u32.totalorder %s932_s6, %s984_s3 }
 0x19e   : > { %p696_p1 = scmp.lt.u32.totalorder %s694_s28, %s690_s11  ;;  %p698_p8 = scmp.lt.u32.totalorder %s690_s11, %s932_s6 }
 0x19f   : > { %p692_p7 = pnand %p691_p4, %p992_p9 }
 0x1a0   : > { %p697_p3 = por %p696_p1, %p695_p12 }
 0x1a1   : > { %p693_p10 = pneg %p692_p7 }
 0x1a2   : > { %p699_p11 = por %p698_p8, %p697_p3 }
 0x1a4   : > { %p700_p0 = pnand %p699_p11, %p693_p10 }
 0x1a6   : > { %703 = shalt.err (!%p700_p0)
}
 0x1a7   : > { %575 = dma.vmem_to_hbm [thread:$0]  (%p992_p9), %s934_s18, 128, %s932_s6, %s407_s8  }
 0x1a8 PF: > { %s433_s4 = sand.u32 1, %s738_s12   ;;  %p993_p6 = scmp.ne.s32.totalorder %s989_s27, 0 }
 0x1a9   : > { %p994_p13 = scmp.ge.s32.totalorder %s758_s17, 2  ;;  %s434_s5 = scalar_lea.sflag [#allocation4], %s433_s4 }
 0x1ab   : > { %p582_p2 = pnand %p994_p13, %p993_p6 }
 0x1ad   : > { %733 = dma.done.wait (!%p582_p2), %s434_s5, 128  }
 0x1ae   : > { %735 = vsyncadd (!%p582_p2), %s434_s5, 4294967168  ;;  %s19_s17 = sadd.s32 1, %s758_s17   ;;  %s995_s12 = smov %s742_s13 }
 0x1af   : > { %p16_p5 = scmp.ge.s32.totalorder %s19_s17, 4   ;;  %s996_s13 = smov %s746_s14 }
 0x1b0   : > { %s997_s14 = smov %s845_s26  ;;  %s998_s15 = smov %s754_s16 }
 0x1b1   : > { %s999_s16 = smov %s1001_s20  ;;  %18 = sbr.rel (!%p16_p5) target bundleno = 6 (0x6), region = 83 }
 0x1b8   :  { %439 = vsyncpa [#allocation3], 1 }
 0x1b9   :  { %441 = vsyncpa [#allocation3 + $0x1], 1 }
 0x1ba   :  { %442 = vsyncpa [#allocation4], 1 }
 0x1bb   :  { %444 = vsyncpa [#allocation4 + $0x1], 1 }

</bundles_post_ra>
